<compile_context>
chip_gen: v7x
topology: tpu7x:2x2x1
jax: 0.10.0
libtpu: 0.0.40
codegen_flags: <defaults>
</compile_context>

<pallas_src>
import functools
import math

import jax
import jax.numpy as jnp
from jax.experimental import pallas as pl
from jax.experimental.pallas import tpu as pltpu

_LANES = 128
_MAX_TM = 4096                    # rows/block: 4096*128*4B = 2 MiB per f32 input block
_NUM_SPLITS = 2                   # leading "parallel" axis -> both TensorCores on v7x
_VMEM_LIMIT = 32 * 1024 * 1024    # covers 3 slabs x 2 buffers x 2 MiB with headroom;
                                  # raises v5e's 16 MiB scoped default, safe on v7x


def _focal_weight(one_minus_pt, gamma):
    """(1 - pt) ** gamma.  Integer gamma -> repeated multiplies (no exp/log)."""
    g = float(gamma)
    if g.is_integer() and g >= 0:
        gi = int(g)
        if gi == 0:
            return jnp.ones_like(one_minus_pt)
        w = one_minus_pt
        for _ in range(gi - 1):
            w = w * one_minus_pt
        return w
    base = jnp.maximum(one_minus_pt, 0.0)
    safe = jnp.maximum(base, 1e-30)            # avoid log(0) inside the pow lowering
    return jnp.where(base > 0.0, jnp.power(safe, g), jnp.zeros_like(base))


def _focal_terms(x, t, gamma):
    """Elementwise focal term (alpha NOT applied here; folded into the final scale)."""
    x = x.astype(jnp.float32)
    t = t.astype(jnp.float32)
    # Stable BCE-with-logits: max(x,0) - x*t + log1p(exp(-|x|))
    bce = jnp.maximum(x, 0.0) - x * t + jnp.log1p(jnp.exp(-jnp.abs(x)))
    pt = jnp.exp(-bce)
    return _focal_weight(1.0 - pt, gamma) * bce


def _focal_none_kernel(x_ref, t_ref, o_ref, *, alpha, gamma):
    """reduction='none': elementwise loss, lane-dense store in the input dtype."""
    o_ref[...] = (alpha * _focal_terms(x_ref[...], t_ref[...], gamma)).astype(o_ref.dtype)


def _focal_reduce_small_kernel(x_ref, t_ref, o_ref, *, gamma, total, apply_mask):
    """Whole slab fits one block: compute, (optionally) mask the tail, sum."""
    loss = _focal_terms(x_ref[...], t_ref[...], gamma)
    if apply_mask:
        row = jax.lax.broadcasted_iota(jnp.int32, loss.shape, 0)
        lane = jax.lax.broadcasted_iota(jnp.int32, loss.shape, 1)
        loss = jnp.where(row * _LANES + lane < total, loss, 0.0)
    o_ref[...] = jnp.sum(loss).reshape(1, 1)


def _focal_reduce_kernel(x_ref, t_ref, o_ref, *, gamma, total, tm,
                         split_blocks, mask_from_block, any_mask):
    """Streaming reduce: output block (8,128) is the resident VPU accumulator."""
    c = pl.program_id(0)          # "parallel": sharded across TensorCores (v7x)
    i = pl.program_id(1)          # "arbitrary": reduction axis

    @pl.when(i == 0)
    def _init():
        o_ref[...] = jnp.zeros_like(o_ref)

    loss = _focal_terms(x_ref[...], t_ref[...], gamma)          # (tm, 128) f32

    def _fold(l):
        # Pure VPU adds: (tm,128) -> (8,128).  The cross-lane collapse happens
        # exactly once, outside the kernel.
        return jnp.sum(l.reshape(tm // 8, 8, _LANES), axis=0)

    if any_mask:
        b = c * split_blocks + i          # logical block index (pre-clamp)

        @pl.when(b < mask_from_block)
        def _full():
            o_ref[...] += _fold(loss)

        @pl.when(b >= mask_from_block)    # tail / overhang blocks only
        def _tail():
            row = jax.lax.broadcasted_iota(jnp.int32, loss.shape, 0)
            lane = jax.lax.broadcasted_iota(jnp.int32, loss.shape, 1)
            flat = (b * tm + row) * _LANES + lane
            o_ref[...] += _fold(jnp.where(flat < total, loss, 0.0))
    else:
        o_ref[...] += _fold(loss)


def focal_loss(inputs, targets, alpha=1, gamma=2, reduction="mean"):
    """Matches FocalLoss.forward(inputs, targets) of the PyTorch module."""
    orig_shape = inputs.shape
    in_dtype = inputs.dtype
    out_dtype = in_dtype if jnp.issubdtype(in_dtype, jnp.floating) else jnp.float32
    total = int(math.prod(orig_shape))

    if total == 0:
        if reduction == "mean":
            return jnp.full((), jnp.nan, jnp.float32)   # torch: mean of empty -> nan
        if reduction == "sum":
            return jnp.zeros((), jnp.float32)
        return jnp.zeros(orig_shape, out_dtype)

    rows = (total + _LANES - 1) // _LANES
    pad = rows * _LANES - total

    xf = jnp.ravel(inputs)                          # native dtype, free view if aligned
    tf = jnp.ravel(targets)
    if not jnp.issubdtype(tf.dtype, jnp.floating):
        tf = tf.astype(jnp.float32)
    if pad:                                         # ragged totals only: copy + zero pad
        xf = jnp.pad(xf, (0, pad))
        tf = jnp.pad(tf, (0, pad))
    xf = xf.reshape(rows, _LANES)
    tf = tf.reshape(rows, _LANES)

    io_bytes = (int(xf.dtype.itemsize) + int(tf.dtype.itemsize)) * total
    cost = pl.CostEstimate(flops=12 * total, transcendentals=3 * total,
                           bytes_accessed=io_bytes + 4)

    if reduction in ("mean", "sum"):
        scale = float(alpha) * ((1.0 / total) if reduction == "mean" else 1.0)

        if rows <= _MAX_TM:
            # Single block == full slab; no grid loop, no scratch.
            kernel = functools.partial(_focal_reduce_small_kernel, gamma=gamma,
                                       total=total, apply_mask=pad > 0)
            partials = pl.pallas_call(
                kernel,
                out_shape=jax.ShapeDtypeStruct((1, 1), jnp.float32),
                grid=(1,),
                in_specs=[pl.BlockSpec((rows, _LANES), lambda i: (0, 0)),
                          pl.BlockSpec((rows, _LANES), lambda i: (0, 0))],
                out_specs=pl.BlockSpec((1, 1), lambda i: (0, 0)),
                compiler_params=pltpu.CompilerParams(
                    dimension_semantics=("arbitrary",),
                    vmem_limit_bytes=_VMEM_LIMIT),
                cost_estimate=cost,
            )(xf, tf)
        else:
            tm = _MAX_TM
            g_blocks = (rows + tm - 1) // tm                       # >= 2
            split_blocks = (g_blocks + _NUM_SPLITS - 1) // _NUM_SPLITS
            mask_from_block = total // (tm * _LANES)               # first block needing a mask
            any_mask = mask_from_block < _NUM_SPLITS * split_blocks

            def in_map(c, i):
                # Clamp the (rare) overhang block of an odd split to stay in
                # bounds; its contribution is zeroed by the in-kernel mask.
                return (jnp.minimum(c * split_blocks + i, g_blocks - 1), 0)

            kernel = functools.partial(
                _focal_reduce_kernel, gamma=gamma, total=total, tm=tm,
                split_blocks=split_blocks, mask_from_block=mask_from_block,
                any_mask=any_mask)
            partials = pl.pallas_call(
                kernel,
                out_shape=jax.ShapeDtypeStruct((_NUM_SPLITS * 8, _LANES), jnp.float32),
                grid=(_NUM_SPLITS, split_blocks),
                in_specs=[pl.BlockSpec((tm, _LANES), in_map),
                          pl.BlockSpec((tm, _LANES), in_map)],
                out_specs=pl.BlockSpec((8, _LANES), lambda c, i: (c, 0)),
                compiler_params=pltpu.CompilerParams(
                    dimension_semantics=("parallel", "arbitrary"),
                    vmem_limit_bytes=_VMEM_LIMIT),
                cost_estimate=cost,
            )(xf, tf)

        # alpha (and 1/total for 'mean') folded into one scalar scale, applied once.
        return (jnp.sum(partials) * scale).astype(jnp.float32)

    # reduction == 'none' (or any other value: PyTorch falls through to F_loss)
    if rows <= _MAX_TM:
        tm, grid = rows, (1,)
    else:
        tm, grid = _MAX_TM, ((rows + _MAX_TM - 1) // _MAX_TM,)
    blk = pl.BlockSpec((tm, _LANES), lambda i: (i, 0))
    kernel = functools.partial(_focal_none_kernel, alpha=float(alpha), gamma=gamma)
    out = pl.pallas_call(
        kernel,
        out_shape=jax.ShapeDtypeStruct((rows, _LANES), out_dtype),
        grid=grid,
        in_specs=[blk, blk],
        out_specs=blk,
        compiler_params=pltpu.CompilerParams(
            dimension_semantics=("parallel",),
            vmem_limit_bytes=_VMEM_LIMIT),
        cost_estimate=cost,
    )(xf, tf)
    out = out.reshape(-1)
    if pad:
        out = out[:total]
    return out.reshape(orig_shape)


if __name__ == "__main__":
    key = jax.random.PRNGKey(0)
    k1, k2, k3, k4, k5, k6, k7, k8 = jax.random.split(key, 8)

    # Pure-jnp reference mirroring the PyTorch module.
    def ref(x, t, alpha=1.0, gamma=2, reduction="mean"):
        x = x.astype(jnp.float32)
        t = t.astype(jnp.float32)
        bce = jnp.maximum(x, 0.0) - x * t + jnp.log1p(jnp.exp(-jnp.abs(x)))
        pt = jnp.exp(-bce)
        fl = alpha * (1.0 - pt) ** gamma * bce
        if reduction == "mean":
            return fl.mean()
        if reduction == "sum":
            return fl.sum()
        return fl

    # 1) Link-prediction style logits / binary labels: [num_edges, 1] (small, aligned)
    logits = jax.random.normal(k1, (256, 1), jnp.float32) * 3.0
    labels = (jax.random.uniform(k2, (256, 1)) < 0.5).astype(jnp.float32)
    loss_mean = focal_loss(logits, labels, alpha=1, gamma=2, reduction="mean")
    loss_sum = focal_loss(logits, labels, alpha=1, gamma=2, reduction="sum")
    loss_none = focal_loss(logits, labels, alpha=1, gamma=2, reduction="none")

    # 2) Ragged shape -> lane-tail padding + in-kernel mask; also float gamma path.
    logits2 = jax.random.normal(k3, (3, 50), jnp.float32)
    labels2 = (jax.random.uniform(k4, (3, 50)) < 0.5).astype(jnp.float32)
    loss2 = focal_loss(logits2, labels2, reduction="mean")
    loss2b = focal_loss(logits2, labels2, alpha=0.25, gamma=1.5, reduction="mean")

    # 3) Multi-block reduce: odd block count exercises the dual-core split, the
    #    partial trailing block and the clamped overhang block.
    logits3 = jax.random.normal(k5, (8200, 128), jnp.float32)
    labels3 = (jax.random.uniform(k6, (8200, 128)) < 0.5).astype(jnp.float32)
    loss3_mean = focal_loss(logits3, labels3, reduction="mean")
    loss3_sum = focal_loss(logits3, labels3, reduction="sum")
    loss3_none = focal_loss(logits3, labels3, reduction="none")

    # 4) bf16 I/O: inputs stay bf16 through the DMA; 'none' output keeps the dtype.
    logits4 = (jax.random.normal(k7, (256, 8), jnp.float32) * 2.0).astype(jnp.bfloat16)
    labels4 = (jax.random.uniform(k8, (256, 8)) < 0.5).astype(jnp.bfloat16)
    loss4_mean = focal_loss(logits4, labels4, reduction="mean")
    loss4_none = focal_loss(logits4, labels4, reduction="none")

    jax.block_until_ready((loss_mean, loss_sum, loss_none, loss2, loss2b,
                           loss3_mean, loss3_sum, loss3_none,
                           loss4_mean, loss4_none))

    assert loss_none.shape == logits.shape and loss_none.dtype == logits.dtype
    assert bool(jnp.allclose(loss_mean, ref(logits, labels, reduction="mean"),
                             rtol=1e-5, atol=1e-6))
    assert bool(jnp.allclose(loss_sum, ref(logits, labels, reduction="sum"),
                             rtol=1e-5, atol=1e-5))
    assert bool(jnp.allclose(loss_none, ref(logits, labels, reduction="none"),
                             rtol=1e-5, atol=1e-6))
    assert bool(jnp.allclose(loss2, ref(logits2, labels2, reduction="mean"),
                             rtol=1e-5, atol=1e-6))
    assert bool(jnp.allclose(loss2b, ref(logits2, labels2, alpha=0.25, gamma=1.5,
                                         reduction="mean"), rtol=1e-5, atol=1e-6))
    assert bool(jnp.allclose(loss3_mean, ref(logits3, labels3, reduction="mean"),
                             rtol=2e-4, atol=1e-6))
    assert bool(jnp.allclose(loss3_sum, ref(logits3, labels3, reduction="sum"),
                             rtol=2e-4, atol=1e-2))
    assert bool(jnp.allclose(loss3_none, ref(logits3, labels3, reduction="none"),
                             rtol=1e-5, atol=1e-6))
    assert loss4_none.dtype == jnp.bfloat16 and loss4_none.shape == logits4.shape
    assert bool(jnp.allclose(loss4_mean, ref(logits4, labels4, reduction="mean"),
                             rtol=5e-3, atol=1e-4))
    assert bool(jnp.allclose(loss4_none.astype(jnp.float32),
                             ref(logits4, labels4, reduction="none"),
                             rtol=2e-2, atol=2e-2))
    assert bool(jnp.isfinite(loss_mean)) and bool(jnp.isfinite(loss3_sum))
    print("KERNEL_OK")
</pallas_src>

<mosaic_0001>
module attributes {stable_mosaic.version = 11 : i64} {
  func.func @_focal_reduce_small_kernel(%arg0: i32, %arg1: memref<2x128xf32, #tpu.memory_space<vmem>>, %arg2: memref<2x128xf32, #tpu.memory_space<vmem>>, %arg3: memref<1x1xf32, #tpu.memory_space<vmem>>) attributes {dimension_semantics = [#tpu.dimension_semantics<arbitrary>], iteration_bounds = array<i64: 1>, scalar_prefetch = 0 : i64, scratch_operands = 0 : i64, tpu.core_type = #tpu.core_type<tc>, window_params = [{pipeline_mode = #tpu.pipeline_mode<synchronous>, transform_indices = @transform_0, window_bounds = array<i64: 2, 128>}, {pipeline_mode = #tpu.pipeline_mode<synchronous>, transform_indices = @transform_1, window_bounds = array<i64: 2, 128>}, {pipeline_mode = #tpu.pipeline_mode<synchronous>, transform_indices = @transform_2, window_bounds = array<i64: 1, 1>}]} {
    %c0 = arith.constant 0 : index
    %c0_0 = arith.constant 0 : index
    %0 = vector.load %arg1[%c0, %c0_0] : memref<2x128xf32, #tpu.memory_space<vmem>>, vector<2x128xf32>
    %c0_1 = arith.constant 0 : index
    %c0_2 = arith.constant 0 : index
    %1 = vector.load %arg2[%c0_1, %c0_2] : memref<2x128xf32, #tpu.memory_space<vmem>>, vector<2x128xf32>
    %cst = arith.constant 0.000000e+00 : f32
    %2 = vector.broadcast %cst : f32 to vector<2x128xf32>
    %3 = arith.maximumf %0, %2 : vector<2x128xf32>
    %4 = arith.mulf %0, %1 : vector<2x128xf32>
    %5 = arith.subf %3, %4 : vector<2x128xf32>
    %6 = math.absf %0 : vector<2x128xf32>
    %cst_3 = arith.constant 0.000000e+00 : f32
    %7 = vector.broadcast %cst_3 : f32 to vector<2x128xf32>
    %8 = arith.subf %7, %6 : vector<2x128xf32>
    %9 = math.exp %8 : vector<2x128xf32>
    %10 = math.log1p %9 : vector<2x128xf32>
    %11 = arith.addf %5, %10 : vector<2x128xf32>
    %cst_4 = arith.constant 0.000000e+00 : f32
    %12 = vector.broadcast %cst_4 : f32 to vector<2x128xf32>
    %13 = arith.subf %12, %11 : vector<2x128xf32>
    %14 = math.exp %13 : vector<2x128xf32>
    %cst_5 = arith.constant 1.000000e+00 : f32
    %15 = vector.broadcast %cst_5 : f32 to vector<2x128xf32>
    %16 = arith.subf %15, %14 : vector<2x128xf32>
    %17 = arith.mulf %16, %16 : vector<2x128xf32>
    %18 = arith.mulf %17, %11 : vector<2x128xf32>
    %19 = vector.shape_cast %18 : vector<2x128xf32> to vector<1x2x128xf32>
    %cst_6 = arith.constant dense<0.000000e+00> : vector<1xf32>
    %20 = vector.multi_reduction <add>, %19, %cst_6 [1, 2] : vector<1x2x128xf32> to vector<1xf32>
    %21 = vector.shape_cast %20 : vector<1xf32> to vector<1x1x1xf32>
    %22 = vector.extract %21[0, 0, 0] : f32 from vector<1x1x1xf32>
    %23 = vector.broadcast %22 : f32 to vector<1x1xf32>
    %c0_7 = arith.constant 0 : index
    %c0_8 = arith.constant 0 : index
    %24 = vector.load %arg3[%c0_7, %c0_8] : memref<1x1xf32, #tpu.memory_space<vmem>>, vector<1x1xf32>
    tpu.vector_store %arg3[%c0_7, %c0_8], %23 {strides = array<i32>} : memref<1x1xf32, #tpu.memory_space<vmem>>, vector<1x1xf32>,
    return
  }
  func.func @transform_0(%arg0: i32) -> (i32, i32) {
    %c0_i32 = arith.constant 0 : i32
    %c0_i32_0 = arith.constant 0 : i32
    %c0_i32_1 = arith.constant 0 : i32
    return %c0_i32, %c0_i32_0 : i32, i32
  }
  func.func @transform_1(%arg0: i32) -> (i32, i32) {
    %c0_i32 = arith.constant 0 : i32
    %c0_i32_0 = arith.constant 0 : i32
    %c0_i32_1 = arith.constant 0 : i32
    return %c0_i32, %c0_i32_0 : i32, i32
  }
  func.func @transform_2(%arg0: i32) -> (i32, i32) {
    %c0_i32 = arith.constant 0 : i32
    %c0_i32_0 = arith.constant 0 : i32
    %c0_i32_1 = arith.constant 0 : i32
    return %c0_i32, %c0_i32_0 : i32, i32
  }
}

</mosaic_0001>

<bundles_post_ra>
// kernel: tpu_custom_call.1
= control target key start
LH: loop header
LB: loop body
LE: loop exit
PB: predicated region body
PF: predicated region fallthrough
CT: control target
= control target key end

     0   :  { %7 = vsyncpa [#allocation3], 0  ;;  %s180_s0 = inlined_call_operand.hbm [shape: f32[2,128], index: 0, kind: input, shape index: {}]   ;;  %s181_s1 = inlined_call_operand.vmem [shape: f32[2,128], index: 1, kind: input, shape index: {}]   ;;  %s182_s2 = inlined_call_operand.hbm [shape: f32[1,1], index: 2, kind: output, shape index: {}]  }
   0x1   :  { %8 = vsyncpa [#allocation4], 0  ;;  %s136_s9 = smov [#allocation2]   ;;  %s88_s13 = scalar_lea.hbm %s180_s0, 32 }
   0x2   :  { %s15_s10 = sshll.u32 %s136_s9, 4  ;;  %p89_p0 = scmp.ne.s32.totalorder %s180_s0, %s88_s13  ;;  %s16_s10 = int_to_ptr.vmem [resolvable:$true] %s15_s10 }
   0x3   :  { %p92_p1 = scmp.lt.u32.totalorder %s88_s13, %s180_s0 }
   0x5   :  { %p94_p2 = pnand %p92_p1, %p89_p0 }
   0x7   :  { %97 = shalt.err (!%p94_p2)
}
   0x8   :  { %s98_s18 = scalar_lea.vmem %s16_s10, 32  ;;  %p103_p4 = scmp.lt.s32.totalorder %s16_s10, %s16_s10 }
   0x9   :  { %p99_p3 = scmp.ne.s32.totalorder %s16_s10, %s98_s18  ;;  %p104_p5 = scmp.lt.s32.totalorder %s98_s18, %s98_s18 }
   0xb   :  { %p105_p6 = por %p104_p5, %p103_p4 }
   0xd   :  { %p106_p7 = pnand %p105_p6, %p99_p3 }
   0xf   :  { %109 = shalt.err (!%p106_p7)
}
  0x10   :  { %18 = dma.hbm_to_vmem [thread:$0]  %s180_s0, 32, %s16_s10, [#allocation3]  }
  0x11   :  { %132 = dma.done.wait [#allocation3], 32  }
  0x12   :  { %133 = vsyncadd [#allocation3], 4294967264  ;;  %v24_v0 = vld [vmem:[#allocation2] sm:$0x3]  ;;  %vm49_vm1 = vcmask 1041408   ;;  %s137_s0 = smov [#allocation5]  }
  0x13   :  { %v29_v1 = vand.u32 2147483647, %v24_v0  ;;  %v25_v7 = vld [vmem:[%s181_s1] sm:$0x3]  ;;  %v26_v9 = vmax.f32 %v24_v0, 0.0  ;;  %s69_s1 = sshll.u32 %s137_s0, 4  ;;  %s70_s1 = int_to_ptr.vmem [resolvable:$true] %s69_s1 }
  0x14   :  { %v27_v10 = vmul.f32 %v25_v7, %v24_v0  ;;  %vm61_vm2 = vcmask 0   ;;  %s110_s24 = scalar_lea.vmem %s70_s1, 16  ;;  %s114_s25 = scalar_lea.vmem %s70_s1, 32 }
  0x15   :  { %v30_v2 = vsub.f32 0.0, %v29_v1  ;;  %p111_p8 = scmp.ne.s32.totalorder %s70_s1, %s110_s24  ;;  %p115_p9 = scmp.lt.s32.totalorder %s70_s1, %s70_s1 }
  0x16   :  { %v28_v14 = vsub.f32 %v26_v9, %v27_v10  ;;  %p116_p10 = scmp.lt.s32.totalorder %s114_s25, %s110_s24 }
  0x17   :  { %v31_v3 = vmul.f32 1.442695, %v30_v2 }
  0x18   :  { %p117_p11 = por %p116_p10, %p115_p9 }
  0x19   :  { %82 = vpow2.f32 %v31_v3 }
  0x1a   :  { %p118_p12 = pnand %p117_p11, %p111_p8 }
  0x23   :  { %v83_v4 = vpop.eup %82 }
  0x24   :  { %v33_v5 = vadd.f32 1.0, %v83_v4  ;;  %v36_v6 = vmul.f32 -0.5, %v83_v4  ;;  %v39_v11 = vand.u32 2147483647, %v83_v4 }
  0x26   :  { %84 = vlog2.f32 %v33_v5  ;;  %v37_v8 = vadd.f32 1.0, %v36_v6  ;;  %vm40_vm0 = vcmp.lt.f32.partialorder %v39_v11, 0.0004427343 }
  0x28   :  { %v38_v12 = vmul.f32 %v83_v4, %v37_v8 }
  0x30   :  { %v85_v13 = vpop.eup %84 }
  0x31   :  { %v35_v15 = vmul.f32 0.6931472, %v85_v13 }
  0x33   :  { %v41_v16 = vsel %vm40_vm0, %v38_v12, %v35_v15 }
  0x34   :  { %v42_v17 = vadd.f32 %v41_v16, %v28_v14 }
  0x36   :  { %v43_v18 = vsub.f32 0.0, %v42_v17 }
  0x38   :  { %v44_v19 = vmul.f32 1.442695, %v43_v18 }
  0x3a   :  { %86 = vpow2.f32 %v44_v19 }
  0x44   :  { %v87_v20 = vpop.eup %86 }
  0x45   :  { %v46_v21 = vsub.f32 1.0, %v87_v20 }
  0x47   :  { %v47_v22 = vmul.f32 %v46_v21, %v46_v21 }
  0x49   :  { %v48_v23 = vmul.f32 %v47_v22, %v42_v17 }
  0x4b   :  { %v50_v24 = vsel %vm49_vm1, %v48_v23, 0.0 }
  0x4c   :  { %51 = vadd.xlane.f32.xlu0 %v50_v24 }
  0xd9   :  { %v52_v25 = vpop.xlane.xlu0 %51 }
  0xda   :  { %v53_v26 = vrot.slane %v52_v25, 4 }
  0xdc   :  { %v54_v27 = vadd.f32 %v53_v26, %v52_v25 }
  0xde   :  { %v55_v28 = vrot.slane %v54_v27, 2 }
  0xe0   :  { %v56_v29 = vadd.f32 %v55_v28, %v54_v27 }
  0xe2   :  { %v57_v30 = vrot.slane %v56_v29, 1 }
  0xe4   :  { %v58_v31 = vadd.f32 %v57_v30, %v56_v29 }
  0xe6   :  { %78 = vpush %v58_v31 }
 0x117   :  { %s79_s23 = spop %78 }
 0x118   :  { %v60_v32 = vstv %s79_s23 }
 0x119   :  { %62 = vst.msk [vmem:[#allocation5] sm:$0x1] %vm61_vm2, %v60_v32 }
 0x11a   :  { %121 = shalt.err (!%p118_p12)
}
 0x11b   :  { %s122_s28 = scalar_lea.hbm %s182_s2, 16 }
 0x11c   :  { %p123_p13 = scmp.ne.s32.totalorder %s182_s2, %s122_s28  ;;  %p126_p0 = scmp.lt.u32.totalorder %s122_s28, %s182_s2 }
 0x11e   :  { %p128_p1 = pnand %p126_p0, %p123_p13 }
 0x120   :  { %131 = shalt.err (!%p128_p1)
}
 0x121   :  { %72 = dma.vmem_to_hbm [thread:$0]  %s70_s1, 16, %s182_s2, [#allocation4]  }
 0x122   :  { %134 = dma.done.wait [#allocation4], 16  }
 0x123   :  { %135 = vsyncadd [#allocation4], 4294967280 }
 0x124   :  { %76 = vsyncpa [#allocation3], 1 }
 0x125   :  { %77 = vsyncpa [#allocation4], 1 }

</bundles_post_ra>
